<compile_context>
chip_gen: v7x
topology: tpu7x:2x2x1
jax: 0.10.0
libtpu: 0.0.40
codegen_flags: <defaults>
</compile_context>

<pallas_src>
import jax
import jax.numpy as jnp
from jax.experimental import pallas as pl
from jax.experimental.pallas import tpu as pltpu


def _linear_attention_kernel(x1_ref, x2_ref, x3_ref, p_ref, out_ref):
    """One batch tile of rows.

    x1/x2/x3 : (TB, C) tiles in native dtype, channels on lanes.
    p        : (4, 3) f32 params; rows 0..2 = W.T (p[i, o] = W[o, i]), row 3 = bias.
    out      : (TB, 3) f32 softmax weights.
    """
    # Channel sums: XLU cross-lane reduce (kernel is HBM-bound, XLU has slack).
    # f32 accumulation regardless of input dtype.
    s1 = jnp.sum(x1_ref[...].astype(jnp.float32), axis=-1, keepdims=True)  # (TB, 1)
    s2 = jnp.sum(x2_ref[...].astype(jnp.float32), axis=-1, keepdims=True)
    s3 = jnp.sum(x3_ref[...].astype(jnp.float32), axis=-1, keepdims=True)

    # Tiny 3x3 affine on the VPU (broadcast-FMA); avoids an N-padded MXU matmul.
    p = p_ref[...]                                                         # (4, 3)
    logits = (s1 * p[0:1, :] + s2 * p[1:2, :] + s3 * p[2:3, :] + p[3:4, :])  # (TB, 3)

    # softmax(dim=1) over the 3 logits; exact divide so rows sum to 1.
    m = jnp.max(logits, axis=-1, keepdims=True)
    e = jnp.exp(logits - m)
    out_ref[...] = e / jnp.sum(e, axis=-1, keepdims=True)


def linear_attention(x1, x2, x3, w, b, *, tile_b=None):
    """x1, x2, x3: (B, C, H, W) with H*W == 1.  w: (3, 3) torch layout (out, in).  b: (3,)."""
    assert x1.shape == x2.shape == x3.shape, (x1.shape, x2.shape, x3.shape)
    B, C = x1.shape[0], x1.shape[1]
    spatial = 1
    for d in x1.shape[2:]:
        spatial *= int(d)
    # Linear(3, 3) after the concat is only valid for H*W == 1 (pooled features).
    assert spatial == 1, "LinearAttention requires H*W == 1 (globally pooled inputs)"

    # Stream inputs in their native dtype (no f32 copy in HBM).
    x1_2d = x1.reshape(B, C)
    x2_2d = x2.reshape(B, C)
    x3_2d = x3.reshape(B, C)
    itemsize = jnp.dtype(x1_2d.dtype).itemsize

    # Params: rows 0..2 = W.T (row i multiplies channel-sum of input i), row 3 = bias.
    params = jnp.concatenate(
        [w.astype(jnp.float32).T, b.reshape(1, 3).astype(jnp.float32)], axis=0)  # (4, 3)

    # Per-generation VMEM sizing: 128-MiB chips (v5e/v6e) get a bigger
    # double-buffer budget than 64-MiB-per-TC parts (v7x / unknown fallback).
    try:
        vmem_cap = int(pltpu.get_tpu_info().vmem_capacity_bytes)
    except Exception:
        vmem_cap = 64 << 20  # conservative (v7x per-TC)
    if vmem_cap >= (128 << 20):
        budget_bytes = 48 << 20
        vmem_limit = 64 << 20
    else:
        budget_bytes = 24 << 20
        vmem_limit = 40 << 20

    # Biggest batch tile whose double-buffered working set
    # (3 inputs x 2 buffers x TB x C x itemsize) stays under the budget.
    if tile_b is None:
        tile_b = budget_bytes // (3 * 2 * C * itemsize)
        tile_b = max(8, min(8192, (tile_b // 8) * 8))
    tile_b = min(tile_b, max(8, ((B + 7) // 8) * 8))  # don't over-allocate for tiny B

    grid = (pl.cdiv(B, tile_b),)  # ragged last block handled by Pallas; no jnp.pad.

    x_spec = pl.BlockSpec((tile_b, C), lambda i: (i, 0))
    p_spec = pl.BlockSpec((4, 3), lambda i: (0, 0))

    out = pl.pallas_call(
        _linear_attention_kernel,
        out_shape=jax.ShapeDtypeStruct((B, 3), jnp.float32),
        grid=grid,
        in_specs=[x_spec, x_spec, x_spec, p_spec],
        out_specs=pl.BlockSpec((tile_b, 3), lambda i: (i, 0)),
        compiler_params=pltpu.CompilerParams(
            dimension_semantics=("parallel",),
            vmem_limit_bytes=vmem_limit,
        ),
        cost_estimate=pl.CostEstimate(
            flops=int(3 * B * C * 2 + B * 3 * 8),
            transcendentals=int(3 * B),
            bytes_accessed=int(3 * B * C * itemsize + B * 3 * 4 + params.size * 4),
        ),
    )(x1_2d, x2_2d, x3_2d, params)
    return out


def _reference(x1, x2, x3, w, b):
    """Pure-JAX reference mirroring the PyTorch module."""
    def feat(x):
        s = jnp.sum(x.astype(jnp.float32), axis=1, keepdims=True)  # (B, 1, H, W)
        return s.reshape(s.shape[0], -1)                           # flatten
    out = jnp.concatenate([feat(x1), feat(x2), feat(x3)], axis=1)  # (B, 3)
    logits = out @ w.astype(jnp.float32).T + b.astype(jnp.float32)
    return jax.nn.softmax(logits, axis=1)


def _check(x1, x2, x3, w, b, **kw):
    out = linear_attention(x1, x2, x3, w, b, **kw)
    jax.block_until_ready(out)
    ref = _reference(x1, x2, x3, w, b)
    assert out.shape == ref.shape, (out.shape, ref.shape)
    assert jnp.allclose(out, ref, atol=1e-4, rtol=1e-4), (out, ref)
    assert jnp.allclose(jnp.sum(out, axis=1), jnp.ones((out.shape[0],)), atol=1e-5)
    return out


if __name__ == "__main__":
    key = jax.random.PRNGKey(0)
    k1, k2, k3, kw, kb, k4, k5, k6 = jax.random.split(key, 8)

    # Deterministic nn.Linear(3, 3)-shaped parameters (torch layout: (out, in)).
    bound = 1.0 / jnp.sqrt(3.0)
    w = jax.random.uniform(kw, (3, 3), minval=-bound, maxval=bound, dtype=jnp.float32)
    b = jax.random.uniform(kb, (3,), minval=-bound, maxval=bound, dtype=jnp.float32)

    # Case 1: small pooled NCHW features with H = W = 1 (required by Linear(3, 3)).
    B, C = 2, 4
    x1 = jax.random.normal(k1, (B, C, 1, 1), dtype=jnp.float32)
    x2 = jax.random.normal(k2, (B, C, 1, 1), dtype=jnp.float32)
    x3 = jax.random.normal(k3, (B, C, 1, 1), dtype=jnp.float32)
    _check(x1, x2, x3, w, b)

    # Case 2: exercises multiple grid steps + a ragged last block (B % tile_b != 0).
    B2, C2 = 13, 8
    y1 = jax.random.normal(k4, (B2, C2, 1, 1), dtype=jnp.float32)
    y2 = jax.random.normal(k5, (B2, C2, 1, 1), dtype=jnp.float32)
    y3 = jax.random.normal(k6, (B2, C2, 1, 1), dtype=jnp.float32)
    _check(y1, y2, y3, w, b, tile_b=8)

    print("KERNEL_OK")
</pallas_src>

<mosaic_0001>
module attributes {stable_mosaic.version = 11 : i64} {
  func.func @_linear_attention_kernel(%arg0: i32, %arg1: memref<8x4xf32, #tpu.memory_space<vmem>>, %arg2: memref<8x4xf32, #tpu.memory_space<vmem>>, %arg3: memref<8x4xf32, #tpu.memory_space<vmem>>, %arg4: memref<4x3xf32, #tpu.memory_space<vmem>>, %arg5: memref<8x3xf32, #tpu.memory_space<vmem>>) attributes {dimension_semantics = [#tpu.dimension_semantics<parallel>], iteration_bounds = array<i64: 1>, scalar_prefetch = 0 : i64, scratch_operands = 0 : i64, tpu.core_type = #tpu.core_type<tc>, window_params = [{transform_indices = @transform_0, window_bounds = array<i64: 8, 4>}, {transform_indices = @transform_1, window_bounds = array<i64: 8, 4>}, {transform_indices = @transform_2, window_bounds = array<i64: 8, 4>}, {pipeline_mode = #tpu.pipeline_mode<synchronous>, transform_indices = @transform_3, window_bounds = array<i64: 4, 3>}, {transform_indices = @transform_4, window_bounds = array<i64: 8, 3>}]} {
    %c0 = arith.constant 0 : index
    %c0_0 = arith.constant 0 : index
    %0 = vector.load %arg1[%c0, %c0_0] : memref<8x4xf32, #tpu.memory_space<vmem>>, vector<8x4xf32>
    %cst = arith.constant dense<0.000000e+00> : vector<8xf32>
    %1 = vector.multi_reduction <add>, %0, %cst [1] : vector<8x4xf32> to vector<8xf32>
    %2 = vector.shape_cast %1 : vector<8xf32> to vector<8x1xf32>
    %c0_1 = arith.constant 0 : index
    %c0_2 = arith.constant 0 : index
    %3 = vector.load %arg2[%c0_1, %c0_2] : memref<8x4xf32, #tpu.memory_space<vmem>>, vector<8x4xf32>
    %cst_3 = arith.constant dense<0.000000e+00> : vector<8xf32>
    %4 = vector.multi_reduction <add>, %3, %cst_3 [1] : vector<8x4xf32> to vector<8xf32>
    %5 = vector.shape_cast %4 : vector<8xf32> to vector<8x1xf32>
    %c0_4 = arith.constant 0 : index
    %c0_5 = arith.constant 0 : index
    %6 = vector.load %arg3[%c0_4, %c0_5] : memref<8x4xf32, #tpu.memory_space<vmem>>, vector<8x4xf32>
    %cst_6 = arith.constant dense<0.000000e+00> : vector<8xf32>
    %7 = vector.multi_reduction <add>, %6, %cst_6 [1] : vector<8x4xf32> to vector<8xf32>
    %8 = vector.shape_cast %7 : vector<8xf32> to vector<8x1xf32>
    %c0_7 = arith.constant 0 : index
    %c0_8 = arith.constant 0 : index
    %9 = vector.load %arg4[%c0_7, %c0_8] : memref<4x3xf32, #tpu.memory_space<vmem>>, vector<4x3xf32>
    %10 = vector.extract_strided_slice %9 {offsets = [0, 0], sizes = [1, 3], strides = [1, 1]} : vector<4x3xf32> to vector<1x3xf32>
    %11 = vector.broadcast %2 : vector<8x1xf32> to vector<8x3xf32>
    %12 = vector.broadcast %10 : vector<1x3xf32> to vector<8x3xf32>
    %13 = arith.mulf %11, %12 : vector<8x3xf32>
    %14 = vector.extract_strided_slice %9 {offsets = [1, 0], sizes = [1, 3], strides = [1, 1]} : vector<4x3xf32> to vector<1x3xf32>
    %15 = vector.broadcast %5 : vector<8x1xf32> to vector<8x3xf32>
    %16 = vector.broadcast %14 : vector<1x3xf32> to vector<8x3xf32>
    %17 = arith.mulf %15, %16 : vector<8x3xf32>
    %18 = arith.addf %13, %17 : vector<8x3xf32>
    %19 = vector.extract_strided_slice %9 {offsets = [2, 0], sizes = [1, 3], strides = [1, 1]} : vector<4x3xf32> to vector<1x3xf32>
    %20 = vector.broadcast %8 : vector<8x1xf32> to vector<8x3xf32>
    %21 = vector.broadcast %19 : vector<1x3xf32> to vector<8x3xf32>
    %22 = arith.mulf %20, %21 : vector<8x3xf32>
    %23 = arith.addf %18, %22 : vector<8x3xf32>
    %24 = vector.extract_strided_slice %9 {offsets = [3, 0], sizes = [1, 3], strides = [1, 1]} : vector<4x3xf32> to vector<1x3xf32>
    %25 = vector.broadcast %24 : vector<1x3xf32> to vector<8x3xf32>
    %26 = arith.addf %23, %25 : vector<8x3xf32>
    %cst_9 = arith.constant dense<0xFF800000> : vector<8xf32>
    %27 = vector.multi_reduction <maximumf>, %26, %cst_9 [1] : vector<8x3xf32> to vector<8xf32>
    %28 = vector.shape_cast %27 : vector<8xf32> to vector<8x1xf32>
    %29 = vector.broadcast %28 : vector<8x1xf32> to vector<8x3xf32>
    %30 = arith.subf %26, %29 : vector<8x3xf32>
    %31 = math.exp %30 : vector<8x3xf32>
    %cst_10 = arith.constant dense<0.000000e+00> : vector<8xf32>
    %32 = vector.multi_reduction <add>, %31, %cst_10 [1] : vector<8x3xf32> to vector<8xf32>
    %33 = vector.shape_cast %32 : vector<8xf32> to vector<8x1xf32>
    %34 = vector.broadcast %33 : vector<8x1xf32> to vector<8x3xf32>
    %35 = arith.divf %31, %34 : vector<8x3xf32>
    %c0_11 = arith.constant 0 : index
    %c0_12 = arith.constant 0 : index
    %36 = vector.load %arg5[%c0_11, %c0_12] : memref<8x3xf32, #tpu.memory_space<vmem>>, vector<8x3xf32>
    tpu.vector_store %arg5[%c0_11, %c0_12], %35 {strides = array<i32>} : memref<8x3xf32, #tpu.memory_space<vmem>>, vector<8x3xf32>,
    return
  }
  func.func @transform_0(%arg0: i32) -> (i32, i32) {
    %c0_i32 = arith.constant 0 : i32
    %c0_i32_0 = arith.constant 0 : i32
    return %arg0, %c0_i32 : i32, i32
  }
  func.func @transform_1(%arg0: i32) -> (i32, i32) {
    %c0_i32 = arith.constant 0 : i32
    %c0_i32_0 = arith.constant 0 : i32
    return %arg0, %c0_i32 : i32, i32
  }
  func.func @transform_2(%arg0: i32) -> (i32, i32) {
    %c0_i32 = arith.constant 0 : i32
    %c0_i32_0 = arith.constant 0 : i32
    return %arg0, %c0_i32 : i32, i32
  }
  func.func @transform_3(%arg0: i32) -> (i32, i32) {
    %c0_i32 = arith.constant 0 : i32
    %c0_i32_0 = arith.constant 0 : i32
    %c0_i32_1 = arith.constant 0 : i32
    return %c0_i32, %c0_i32_0 : i32, i32
  }
  func.func @transform_4(%arg0: i32) -> (i32, i32) {
    %c0_i32 = arith.constant 0 : i32
    %c0_i32_0 = arith.constant 0 : i32
    return %arg0, %c0_i32 : i32, i32
  }
}

</mosaic_0001>

<bundles_post_ra>
// kernel: tpu_custom_call.1
= control target key start
LH: loop header
LB: loop body
LE: loop exit
PB: predicated region body
PF: predicated region fallthrough
CT: control target
= control target key end

     0   :  { %9 = vsyncpa [#allocation3], 0  ;;  %s275_s0 = inlined_call_operand.hbm [shape: f32[2,4], index: 0, kind: input, shape index: {}]   ;;  %s276_s1 = inlined_call_operand.vmem [shape: f32[2,4], index: 1, kind: input, shape index: {}]   ;;  %s277_s2 = inlined_call_operand.hbm [shape: f32[2,4], index: 2, kind: input, shape index: {}]   ;;  %s278_s3 = inlined_call_operand.vmem [shape: f32[4,3], index: 3, kind: input, shape index: {}]   ;;  %s279_s4 = inlined_call_operand.hbm [shape: f32[2,3], index: 4, kind: output, shape index: {}]  }
   0x1   :  { %10 = vsyncpa [#allocation6], 0 }
   0x2   :  { %11 = vsyncpa [#allocation4], 0 }
   0x3   :  { %16 = vsyncadd [#allocation3], 96  ;;  %s194_s15 = smov [#allocation2]   ;;  %s122_s19 = scalar_lea.hbm %s275_s0, 32 }
   0x4   :  { %s17_s16 = sshll.u32 %s194_s15, 4  ;;  %p123_p0 = scmp.ne.s32.totalorder %s275_s0, %s122_s19  ;;  %s18_s16 = int_to_ptr.vmem [resolvable:$true] %s17_s16 }
   0x5   :  { %p126_p1 = scmp.lt.u32.totalorder %s122_s19, %s275_s0 }
   0x7   :  { %p128_p2 = pnand %p126_p1, %p123_p0 }
   0x9   :  { %131 = shalt.err (!%p128_p2)
}
   0xa   :  { %s132_s24 = scalar_lea.vmem %s18_s16, 32  ;;  %s136_s25 = scalar_lea.vmem %s18_s16, 128 }
   0xb   :  { %p133_p3 = scmp.ne.s32.totalorder %s18_s16, %s132_s24  ;;  %p137_p4 = scmp.lt.s32.totalorder %s18_s16, %s18_s16 }
   0xc   :  { %p138_p5 = scmp.lt.s32.totalorder %s136_s25, %s132_s24 }
   0xe   :  { %p139_p6 = por %p138_p5, %p137_p4 }
  0x10   :  { %p140_p7 = pnand %p139_p6, %p133_p3 }
  0x12   :  { %143 = shalt.err (!%p140_p7)
}
  0x13   :  { %s195_s26 = smov 32   ;;  %s196_s27 = smov 2  }
  0x14   :  { %23 = dma.hbm_to_vmem [thread:$0]  %s275_s0, 32, %s18_s16, [#allocation3], %s195_s26, %s195_s26, %s196_s27  }
  0x15   :  { %30 = vsyncadd [#allocation6], 96  ;;  %s197_s30 = smov [#allocation5]   ;;  %s144_s8 = scalar_lea.hbm %s277_s2, 32 }
  0x16   :  { %s31_s5 = sshll.u32 %s197_s30, 4  ;;  %p145_p8 = scmp.ne.s32.totalorder %s277_s2, %s144_s8  ;;  %s32_s5 = int_to_ptr.vmem [resolvable:$true] %s31_s5 }
  0x17   :  { %p148_p9 = scmp.lt.u32.totalorder %s144_s8, %s277_s2 }
  0x19   :  { %p150_p10 = pnand %p148_p9, %p145_p8 }
  0x1b   :  { %153 = shalt.err (!%p150_p10)
}
  0x1c   :  { %s154_s13 = scalar_lea.vmem %s32_s5, 32  ;;  %s158_s0 = scalar_lea.vmem %s32_s5, 128 }
  0x1d   :  { %p155_p11 = scmp.ne.s32.totalorder %s32_s5, %s154_s13  ;;  %p159_p12 = scmp.lt.s32.totalorder %s32_s5, %s32_s5 }
  0x1e   :  { %p160_p13 = scmp.lt.s32.totalorder %s158_s0, %s154_s13 }
  0x20   :  { %p161_p0 = por %p160_p13, %p159_p12 }
  0x22   :  { %p162_p1 = pnand %p161_p0, %p155_p11 }
  0x24   :  { %165 = shalt.err (!%p162_p1)
}
  0x25   :  { %37 = dma.hbm_to_vmem [thread:$0]  %s277_s2, 32, %s32_s5, [#allocation6], %s195_s26, %s195_s26, %s196_s27  }
  0x26   :  { %188 = dma.done.wait [#allocation3], 128  }
  0x27   :  { %189 = vsyncadd [#allocation3], 4294967168 }
  0x28   :  { %190 = dma.done.wait [#allocation6], 128  }
  0x29   :  { %191 = vsyncadd [#allocation6], 4294967168  ;;  %vm47_vm0 = vcmask 31744   ;;  %v46_v0 = vld [vmem:[#allocation2] sm:$0xff]  ;;  %v51_v1 = vld [vmem:[%s276_s1] sm:$0xff]  ;;  %v60_v6 = vlaneseq  ;;  %vm82_vm1 = vcmask 23552  }
  0x2a   :  { %v55_v2 = vld [vmem:[#allocation5] sm:$0xff]  ;;  %v48_v3 = vsel %vm47_vm0, %v46_v0, 0.0  ;;  %v52_v5 = vsel %vm47_vm0, %v51_v1, 0.0  ;;  %v59_v11 = vld [vmem:[%s278_s3] sm:$0xf] }
  0x2b   :  { %v56_v4 = vsel %vm47_vm0, %v55_v2, 0.0  ;;  %49 = vadd.xlane.f32.xlu0 %v48_v3  ;;  %v61_v7 = vshrl.u32 %v60_v6, 7 }
  0x2c   :  { %57 = vadd.xlane.f32.xlu1 %v56_v4 }
  0x2d   :  { %v62_v8 = vsub.s32 0, %v61_v7  ;;  %v67_v9 = vsub.s32 1, %v61_v7  ;;  %v73_v10 = vsub.s32 2, %v61_v7  ;;  %v79_v17 = vsub.s32 3, %v61_v7 }
  0x2f   :  { %53 = vadd.xlane.f32.xlu0 %v52_v5  ;;  %v63_v13 = vrot.slane %v59_v11, %v62_v8  ;;  %v68_v14 = vrot.slane %v59_v11, %v67_v9  ;;  %v74_v15 = vrot.slane %v59_v11, %v73_v10  ;;  %v80_v23 = vrot.slane %v59_v11, %v79_v17 }
  0xb8   :  { %v50_v12 = vpop.xlane.xlu0 %49 }
  0xb9   :  { %v58_v16 = vpop.xlane.xlu1 %57  ;;  %v64_v19 = vmul.f32 %v63_v13, %v50_v12 }
  0xba   :  { %v75_v21 = vmul.f32 %v74_v15, %v58_v16 }
  0xbc   :  { %v54_v18 = vpop.xlane.xlu0 %53 }
  0xbd   :  { %v69_v20 = vmul.f32 %v68_v14, %v54_v18 }
  0xbf   :  { %v70_v22 = vadd.f32 %v69_v20, %v64_v19 }
  0xc1   :  { %v76_v24 = vadd.f32 %v75_v21, %v70_v22 }
  0xc3   :  { %v81_v25 = vadd.f32 %v80_v23, %v76_v24 }
  0xc5   :  { %v83_v26 = vsel %vm82_vm1, %v81_v25, -inf }
  0xc6   :  { %84 = vmax.xlane.f32.xlu1 %v83_v26 }
 0x153   :  { %v85_v27 = vpop.xlane.xlu1 %84 }
 0x154   :  { %v86_v28 = vsub.f32 %v81_v25, %v85_v27 }
 0x156   :  { %v87_v29 = vmul.f32 1.442695, %v86_v28 }
 0x158   :  { %118 = vpow2.f32 %v87_v29 }
 0x162   :  { %v119_v30 = vpop.eup %118 }
 0x163   :  { %v89_v31 = vsel %vm82_vm1, %v119_v30, 0.0 }
 0x164   :  { %90 = vadd.xlane.f32.xlu0 %v89_v31 }
 0x1f1   :  { %v91_v32 = vpop.xlane.xlu0 %90 }
 0x1f2   :  { %120 = vrcp.f32 %v91_v32 }
 0x1fc   :  { %v121_v33 = vpop.eup %120 }
 0x1fd   :  { %v93_v34 = vmul.f32 %v121_v33, %v119_v30 }
 0x1ff   :  { %94 = vst.msk [vmem:[#allocation7] sm:$0xff] %vm82_vm1, %v93_v34 }
 0x200   :  { %99 = vsyncadd [#allocation4], 96  ;;  %s198_s1 = smov [#allocation7]  }
 0x201   :  { %s100_s3 = sshll.u32 %s198_s1, 4  ;;  %s101_s3 = int_to_ptr.vmem [resolvable:$true] %s100_s3 }
 0x202   :  { %s166_s19 = scalar_lea.vmem %s101_s3, 32  ;;  %s170_s20 = scalar_lea.vmem %s101_s3, 128 }
 0x203   :  { %p167_p2 = scmp.ne.s32.totalorder %s101_s3, %s166_s19  ;;  %p171_p3 = scmp.lt.s32.totalorder %s101_s3, %s101_s3 }
 0x204   :  { %p172_p4 = scmp.lt.s32.totalorder %s170_s20, %s166_s19 }
 0x206   :  { %p173_p5 = por %p172_p4, %p171_p3 }
 0x208   :  { %p174_p6 = pnand %p173_p5, %p167_p2 }
 0x20a   :  { %177 = shalt.err (!%p174_p6)
}
 0x20b   :  { %s178_s23 = scalar_lea.hbm %s279_s4, 32 }
 0x20c   :  { %p179_p7 = scmp.ne.s32.totalorder %s279_s4, %s178_s23  ;;  %p182_p8 = scmp.lt.u32.totalorder %s178_s23, %s279_s4 }
 0x20e   :  { %p184_p9 = pnand %p182_p8, %p179_p7 }
 0x210   :  { %187 = shalt.err (!%p184_p9)
}
 0x211   :  { %106 = dma.vmem_to_hbm [thread:$0]  %s101_s3, 32, %s279_s4, [#allocation4], %s195_s26, %s195_s26, %s196_s27  }
 0x212   :  { %192 = dma.done.wait [#allocation4], 128  }
 0x213   :  { %193 = vsyncadd [#allocation4], 4294967168 }
 0x214   :  { %110 = vsyncpa [#allocation3], 1 }
 0x215   :  { %111 = vsyncpa [#allocation6], 1 }
 0x216   :  { %112 = vsyncpa [#allocation4], 1 }

</bundles_post_ra>
